<compile_context>
chip_gen: v5e
topology: v5e:2x2
jax: 0.10.0
libtpu: 0.0.40
codegen_flags: <defaults>
</compile_context>

<pallas_src>
import math

import jax
import jax.numpy as jnp
from jax.experimental import pallas as pl
from jax.experimental.pallas import tpu as pltpu

# ----------------------------- config ---------------------------------------
N = 2            # batch
L = 8            # sequence length
E = 32           # embed_size
H = 4            # heads
D = E // H       # head_dim
FE = 2           # forward_expansion
HID = FE * E     # ffn hidden
NL = N * L       # flattened (batch*seq) rows
LN_EPS = 1e-5


def _layernorm(x, gamma, beta):
    mu = jnp.mean(x, axis=-1, keepdims=True)
    var = jnp.mean((x - mu) ** 2, axis=-1, keepdims=True)
    inv = jax.lax.rsqrt(var + LN_EPS)
    return (x - mu) * inv * gamma + beta


# ----------------------------- kernel ---------------------------------------
def transformer_block_kernel(
    q_ref,                               # (NL, E)   raw query (residual input)
    v_ref,                               # (NL, E)   raw value
    wv_ref,                              # (E, E)    kron(I_H, wv) per-head value proj
    wo_ref, bo_ref,                      # fc_out    (E, E), (1, E)
    g1_ref, be1_ref, g2_ref, be2_ref,    # LayerNorm params (1, E) each
    w1_ref, bf1_ref, w2_ref, bf2_ref,    # FFN (E, HID), (1, HID), (HID, E), (1, E)
    bblock_ref,                          # (NL, NL)  1.0 where two rows share a batch
    out_ref,                             # (NL, E)
):
    q_in = q_ref[...]                                 # (NL, E)

    # Per-head value projection, fused into one (NL,E)@(E,E) matmul.
    # NOTE(scale): at realistic sizes cast operands to bf16 (keep
    # preferred_element_type=f32) to double MXU throughput; irrelevant here.
    v = jnp.dot(v_ref[...], wv_ref[...], preferred_element_type=jnp.float32)

    # Attention collapses to the per-batch sum of projected values replicated
    # onto every row of that batch (softmax row-sums are identically 1 when
    # mask is None).  One tiny (NL,NL)@(NL,E) MXU push against a 0/1 matrix.
    attn = jnp.dot(bblock_ref[...], v, preferred_element_type=jnp.float32)

    # fc_out
    attn = jnp.dot(attn, wo_ref[...], preferred_element_type=jnp.float32) + bo_ref[...]

    # residual + LayerNorm 1   (dropout == identity)
    x1 = _layernorm(attn + q_in, g1_ref[...], be1_ref[...])

    # feed-forward
    h1 = jnp.dot(x1, w1_ref[...], preferred_element_type=jnp.float32) + bf1_ref[...]
    h1 = jnp.maximum(h1, 0.0)
    ff = jnp.dot(h1, w2_ref[...], preferred_element_type=jnp.float32) + bf2_ref[...]

    # residual + LayerNorm 2   (dropout == identity)
    out_ref[...] = _layernorm(ff + x1, g2_ref[...], be2_ref[...]).astype(out_ref.dtype)


# ----------------------------- constant prep (once, off the hot path) --------
def prepare_constants(params):
    """Build all constant operands once; NOT re-run per forward call."""
    # Block-diagonal per-head value projection, fused into one (E, E) weight.
    wv_bd = jnp.kron(jnp.eye(H, dtype=jnp.float32), params["wv"])        # (E, E)
    # Same-batch block matrix: bblock[i, j] = 1 iff rows i, j share a batch.
    row = jnp.arange(NL, dtype=jnp.int32)
    bblock = (row[:, None] // L == row[None, :] // L).astype(jnp.float32)  # (NL, NL)
    return {"wv_bd": wv_bd, "bblock": bblock}


# ----------------------------- wrapper ---------------------------------------
def transformer_block(value, query, params, consts):
    n, seq, emb = query.shape
    assert (n, seq, emb) == (N, L, E)

    q_flat = query.reshape(NL, E)
    v_flat = value.reshape(NL, E)

    args = (q_flat, v_flat, consts["wv_bd"],
            params["wo"], params["bo"],
            params["g1"], params["be1"], params["g2"], params["be2"],
            params["w1"], params["bf1"], params["w2"], params["bf2"],
            consts["bblock"])

    # Single grid step: the entire forward pass is VMEM-resident at once
    # (a few KB; fine on v5e/v6e 128 MiB and v7x 64 MiB).  If this block is
    # ever batched over many instances, add a leading "parallel" grid axis so
    # v7x shards it across both TensorCores and the matmul M dim reaches the
    # MXU's 128/256 rows, and keep the output last dim a multiple of 128.
    out_flat = pl.pallas_call(
        transformer_block_kernel,
        out_shape=jax.ShapeDtypeStruct((NL, E), query.dtype),
        grid_spec=pltpu.PrefetchScalarGridSpec(
            num_scalar_prefetch=0,
            grid=(1,),
            in_specs=[pl.BlockSpec(a.shape, lambda i: (0, 0)) for a in args],
            out_specs=pl.BlockSpec((NL, E), lambda i: (0, 0)),
        ),
        compiler_params=pltpu.CompilerParams(
            dimension_semantics=("arbitrary",)),
    )(*args)
    return out_flat.reshape(N, L, E)


# ----------------------------- pure-JAX reference -----------------------------
def reference(value, key, query, params):
    """Literal translation of the PyTorch TransformerBlock forward."""
    def ln(x, g, b):
        mu = jnp.mean(x, axis=-1, keepdims=True)
        var = jnp.mean((x - mu) ** 2, axis=-1, keepdims=True)
        return (x - mu) / jnp.sqrt(var + LN_EPS) * g + b

    n, ql, _ = query.shape
    v = value.reshape(n, L, H, D) @ params["wv"]
    k = key.reshape(n, L, H, D) @ params["wk"]
    q = query.reshape(n, L, H, D) @ params["wq"]
    # NOTE: 'k' and 'v' are independent summed indices, exactly as in the
    # source module's torch.einsum strings.
    energy = jnp.einsum("nqhd,nkhd->nhqk", q, k)
    attention = jax.nn.softmax(energy / math.sqrt(E), axis=3)
    out = jnp.einsum("nhqk,nvhd->nqhd", attention, v).reshape(n, ql, E)
    out = out @ params["wo"] + params["bo"][0]
    x = ln(out + query, params["g1"][0], params["be1"][0])
    ff = (jnp.maximum(x @ params["w1"] + params["bf1"][0], 0.0)
          @ params["w2"] + params["bf2"][0])
    return ln(ff + x, params["g2"][0], params["be2"][0])


# ----------------------------- main ------------------------------------------
if __name__ == "__main__":
    root = jax.random.PRNGKey(0)
    keys = jax.random.split(root, 16)

    def rnd(kk, shape, scale=0.1):
        return (scale * jax.random.normal(kk, shape)).astype(jnp.float32)

    params = {
        "wq": rnd(keys[0], (D, D)),
        "wk": rnd(keys[1], (D, D)),
        "wv": rnd(keys[2], (D, D)),
        "wo": rnd(keys[3], (E, E)),
        "bo": rnd(keys[4], (1, E)),
        "g1": jnp.ones((1, E), jnp.float32),
        "be1": jnp.zeros((1, E), jnp.float32),
        "g2": jnp.ones((1, E), jnp.float32),
        "be2": jnp.zeros((1, E), jnp.float32),
        "w1": rnd(keys[5], (E, HID)),
        "bf1": rnd(keys[6], (1, HID)),
        "w2": rnd(keys[7], (HID, E)),
        "bf2": rnd(keys[8], (1, E)),
    }

    value = rnd(keys[9], (N, L, E), scale=1.0)
    key_ = rnd(keys[10], (N, L, E), scale=1.0)
    query = rnd(keys[11], (N, L, E), scale=1.0)

    # Constant operands built exactly once, outside the per-call path.
    consts = prepare_constants(params)

    # `key_` is provably unused by the forward pass (independent summed index
    # in the einsums + softmax rows summing to 1), so the kernel never reads it.
    out = transformer_block(value, query, params, consts)
    out = jax.block_until_ready(out)

    ref = reference(value, key_, query, params)
    assert out.shape == (N, L, E)
    # Difference vs the literal reference is only (1 - sum_k softmax) ~ 1e-7
    # plus f32 MXU accumulation order; 1e-3 leaves ample headroom.
    err = jnp.max(jnp.abs(out - ref))
    assert jnp.allclose(out, ref, atol=1e-3, rtol=1e-3), f"max err {err}"

    print("KERNEL_OK")
</pallas_src>

<mosaic_0001>
module attributes {stable_mosaic.version = 11 : i64} {
  func.func @transformer_block_kernel(%arg0: i32, %arg1: memref<16x32xf32, #tpu.memory_space<vmem>>, %arg2: memref<16x32xf32, #tpu.memory_space<vmem>>, %arg3: memref<32x32xf32, #tpu.memory_space<vmem>>, %arg4: memref<32x32xf32, #tpu.memory_space<vmem>>, %arg5: memref<1x32xf32, #tpu.memory_space<vmem>>, %arg6: memref<1x32xf32, #tpu.memory_space<vmem>>, %arg7: memref<1x32xf32, #tpu.memory_space<vmem>>, %arg8: memref<1x32xf32, #tpu.memory_space<vmem>>, %arg9: memref<1x32xf32, #tpu.memory_space<vmem>>, %arg10: memref<32x64xf32, #tpu.memory_space<vmem>>, %arg11: memref<1x64xf32, #tpu.memory_space<vmem>>, %arg12: memref<64x32xf32, #tpu.memory_space<vmem>>, %arg13: memref<1x32xf32, #tpu.memory_space<vmem>>, %arg14: memref<16x16xf32, #tpu.memory_space<vmem>>, %arg15: memref<16x32xf32, #tpu.memory_space<vmem>>) attributes {dimension_semantics = [#tpu.dimension_semantics<arbitrary>], iteration_bounds = array<i64: 1>, scalar_prefetch = 0 : i64, scratch_operands = 0 : i64, tpu.core_type = #tpu.core_type<tc>, window_params = [{pipeline_mode = #tpu.pipeline_mode<synchronous>, transform_indices = @transform_0, window_bounds = array<i64: 16, 32>}, {pipeline_mode = #tpu.pipeline_mode<synchronous>, transform_indices = @transform_1, window_bounds = array<i64: 16, 32>}, {pipeline_mode = #tpu.pipeline_mode<synchronous>, transform_indices = @transform_2, window_bounds = array<i64: 32, 32>}, {pipeline_mode = #tpu.pipeline_mode<synchronous>, transform_indices = @transform_3, window_bounds = array<i64: 32, 32>}, {pipeline_mode = #tpu.pipeline_mode<synchronous>, transform_indices = @transform_4, window_bounds = array<i64: 1, 32>}, {pipeline_mode = #tpu.pipeline_mode<synchronous>, transform_indices = @transform_5, window_bounds = array<i64: 1, 32>}, {pipeline_mode = #tpu.pipeline_mode<synchronous>, transform_indices = @transform_6, window_bounds = array<i64: 1, 32>}, {pipeline_mode = #tpu.pipeline_mode<synchronous>, transform_indices = @transform_7, window_bounds = array<i64: 1, 32>}, {pipeline_mode = #tpu.pipeline_mode<synchronous>, transform_indices = @transform_8, window_bounds = array<i64: 1, 32>}, {pipeline_mode = #tpu.pipeline_mode<synchronous>, transform_indices = @transform_9, window_bounds = array<i64: 32, 64>}, {pipeline_mode = #tpu.pipeline_mode<synchronous>, transform_indices = @transform_10, window_bounds = array<i64: 1, 64>}, {pipeline_mode = #tpu.pipeline_mode<synchronous>, transform_indices = @transform_11, window_bounds = array<i64: 64, 32>}, {pipeline_mode = #tpu.pipeline_mode<synchronous>, transform_indices = @transform_12, window_bounds = array<i64: 1, 32>}, {pipeline_mode = #tpu.pipeline_mode<synchronous>, transform_indices = @transform_13, window_bounds = array<i64: 16, 16>}, {pipeline_mode = #tpu.pipeline_mode<synchronous>, transform_indices = @transform_14, window_bounds = array<i64: 16, 32>}]} {
    %c0 = arith.constant 0 : index
    %c0_0 = arith.constant 0 : index
    %0 = vector.load %arg1[%c0, %c0_0] : memref<16x32xf32, #tpu.memory_space<vmem>>, vector<16x32xf32>
    %c0_1 = arith.constant 0 : index
    %c0_2 = arith.constant 0 : index
    %1 = vector.load %arg2[%c0_1, %c0_2] : memref<16x32xf32, #tpu.memory_space<vmem>>, vector<16x32xf32>
    %c0_3 = arith.constant 0 : index
    %c0_4 = arith.constant 0 : index
    %2 = vector.load %arg3[%c0_3, %c0_4] : memref<32x32xf32, #tpu.memory_space<vmem>>, vector<32x32xf32>
    %cst = arith.constant dense<0.000000e+00> : vector<16x32xf32>
    %3 = tpu.matmul %1, %2, %cst {dimension_numbers = #tpu.dot_dimension_numbers<[1], [0], [0], [1], [0, 0, 1, 1], [], []>} : vector<16x32xf32>, vector<32x32xf32>, vector<16x32xf32> -> vector<16x32xf32>
    %c0_5 = arith.constant 0 : index
    %c0_6 = arith.constant 0 : index
    %4 = vector.load %arg14[%c0_5, %c0_6] : memref<16x16xf32, #tpu.memory_space<vmem>>, vector<16x16xf32>
    %cst_7 = arith.constant dense<0.000000e+00> : vector<16x32xf32>
    %5 = tpu.matmul %4, %3, %cst_7 {dimension_numbers = #tpu.dot_dimension_numbers<[1], [0], [0], [1], [0, 0, 1, 1], [], []>} : vector<16x16xf32>, vector<16x32xf32>, vector<16x32xf32> -> vector<16x32xf32>
    %c0_8 = arith.constant 0 : index
    %c0_9 = arith.constant 0 : index
    %6 = vector.load %arg4[%c0_8, %c0_9] : memref<32x32xf32, #tpu.memory_space<vmem>>, vector<32x32xf32>
    %cst_10 = arith.constant dense<0.000000e+00> : vector<16x32xf32>
    %7 = tpu.matmul %5, %6, %cst_10 {dimension_numbers = #tpu.dot_dimension_numbers<[1], [0], [0], [1], [0, 0, 1, 1], [], []>} : vector<16x32xf32>, vector<32x32xf32>, vector<16x32xf32> -> vector<16x32xf32>
    %c0_11 = arith.constant 0 : index
    %c0_12 = arith.constant 0 : index
    %8 = vector.load %arg5[%c0_11, %c0_12] : memref<1x32xf32, #tpu.memory_space<vmem>>, vector<1x32xf32>
    %9 = vector.broadcast %8 : vector<1x32xf32> to vector<16x32xf32>
    %10 = arith.addf %7, %9 : vector<16x32xf32>
    %11 = arith.addf %10, %0 : vector<16x32xf32>
    %c0_13 = arith.constant 0 : index
    %c0_14 = arith.constant 0 : index
    %12 = vector.load %arg6[%c0_13, %c0_14] : memref<1x32xf32, #tpu.memory_space<vmem>>, vector<1x32xf32>
    %c0_15 = arith.constant 0 : index
    %c0_16 = arith.constant 0 : index
    %13 = vector.load %arg7[%c0_15, %c0_16] : memref<1x32xf32, #tpu.memory_space<vmem>>, vector<1x32xf32>
    %cst_17 = arith.constant dense<0.000000e+00> : vector<16xf32>
    %14 = vector.multi_reduction <add>, %11, %cst_17 [1] : vector<16x32xf32> to vector<16xf32>
    %15 = vector.shape_cast %14 : vector<16xf32> to vector<16x1xf32>
    %cst_18 = arith.constant 3.200000e+01 : f32
    %16 = vector.broadcast %cst_18 : f32 to vector<16x1xf32>
    %17 = arith.divf %15, %16 : vector<16x1xf32>
    %18 = vector.broadcast %17 : vector<16x1xf32> to vector<16x32xf32>
    %19 = arith.subf %11, %18 : vector<16x32xf32>
    %20 = arith.mulf %19, %19 : vector<16x32xf32>
    %cst_19 = arith.constant dense<0.000000e+00> : vector<16xf32>
    %21 = vector.multi_reduction <add>, %20, %cst_19 [1] : vector<16x32xf32> to vector<16xf32>
    %22 = vector.shape_cast %21 : vector<16xf32> to vector<16x1xf32>
    %cst_20 = arith.constant 3.200000e+01 : f32
    %23 = vector.broadcast %cst_20 : f32 to vector<16x1xf32>
    %24 = arith.divf %22, %23 : vector<16x1xf32>
    %cst_21 = arith.constant 9.99999974E-6 : f32
    %25 = vector.broadcast %cst_21 : f32 to vector<16x1xf32>
    %26 = arith.addf %24, %25 : vector<16x1xf32>
    %27 = math.rsqrt %26 : vector<16x1xf32>
    %28 = vector.broadcast %17 : vector<16x1xf32> to vector<16x32xf32>
    %29 = arith.subf %11, %28 : vector<16x32xf32>
    %30 = vector.broadcast %27 : vector<16x1xf32> to vector<16x32xf32>
    %31 = arith.mulf %29, %30 : vector<16x32xf32>
    %32 = vector.broadcast %12 : vector<1x32xf32> to vector<16x32xf32>
    %33 = arith.mulf %31, %32 : vector<16x32xf32>
    %34 = vector.broadcast %13 : vector<1x32xf32> to vector<16x32xf32>
    %35 = arith.addf %33, %34 : vector<16x32xf32>
    %c0_22 = arith.constant 0 : index
    %c0_23 = arith.constant 0 : index
    %36 = vector.load %arg10[%c0_22, %c0_23] : memref<32x64xf32, #tpu.memory_space<vmem>>, vector<32x64xf32>
    %cst_24 = arith.constant dense<0.000000e+00> : vector<16x64xf32>
    %37 = tpu.matmul %35, %36, %cst_24 {dimension_numbers = #tpu.dot_dimension_numbers<[1], [0], [0], [1], [0, 0, 1, 1], [], []>} : vector<16x32xf32>, vector<32x64xf32>, vector<16x64xf32> -> vector<16x64xf32>
    %c0_25 = arith.constant 0 : index
    %c0_26 = arith.constant 0 : index
    %38 = vector.load %arg11[%c0_25, %c0_26] : memref<1x64xf32, #tpu.memory_space<vmem>>, vector<1x64xf32>
    %39 = vector.broadcast %38 : vector<1x64xf32> to vector<16x64xf32>
    %40 = arith.addf %37, %39 : vector<16x64xf32>
    %cst_27 = arith.constant 0.000000e+00 : f32
    %41 = vector.broadcast %cst_27 : f32 to vector<16x64xf32>
    %42 = arith.maximumf %40, %41 : vector<16x64xf32>
    %c0_28 = arith.constant 0 : index
    %c0_29 = arith.constant 0 : index
    %43 = vector.load %arg12[%c0_28, %c0_29] : memref<64x32xf32, #tpu.memory_space<vmem>>, vector<64x32xf32>
    %cst_30 = arith.constant dense<0.000000e+00> : vector<16x32xf32>
    %44 = tpu.matmul %42, %43, %cst_30 {dimension_numbers = #tpu.dot_dimension_numbers<[1], [0], [0], [1], [0, 0, 1, 1], [], []>} : vector<16x64xf32>, vector<64x32xf32>, vector<16x32xf32> -> vector<16x32xf32>
    %c0_31 = arith.constant 0 : index
    %c0_32 = arith.constant 0 : index
    %45 = vector.load %arg13[%c0_31, %c0_32] : memref<1x32xf32, #tpu.memory_space<vmem>>, vector<1x32xf32>
    %46 = vector.broadcast %45 : vector<1x32xf32> to vector<16x32xf32>
    %47 = arith.addf %44, %46 : vector<16x32xf32>
    %48 = arith.addf %47, %35 : vector<16x32xf32>
    %c0_33 = arith.constant 0 : index
    %c0_34 = arith.constant 0 : index
    %49 = vector.load %arg8[%c0_33, %c0_34] : memref<1x32xf32, #tpu.memory_space<vmem>>, vector<1x32xf32>
    %c0_35 = arith.constant 0 : index
    %c0_36 = arith.constant 0 : index
    %50 = vector.load %arg9[%c0_35, %c0_36] : memref<1x32xf32, #tpu.memory_space<vmem>>, vector<1x32xf32>
    %cst_37 = arith.constant dense<0.000000e+00> : vector<16xf32>
    %51 = vector.multi_reduction <add>, %48, %cst_37 [1] : vector<16x32xf32> to vector<16xf32>
    %52 = vector.shape_cast %51 : vector<16xf32> to vector<16x1xf32>
    %cst_38 = arith.constant 3.200000e+01 : f32
    %53 = vector.broadcast %cst_38 : f32 to vector<16x1xf32>
    %54 = arith.divf %52, %53 : vector<16x1xf32>
    %55 = vector.broadcast %54 : vector<16x1xf32> to vector<16x32xf32>
    %56 = arith.subf %48, %55 : vector<16x32xf32>
    %57 = arith.mulf %56, %56 : vector<16x32xf32>
    %cst_39 = arith.constant dense<0.000000e+00> : vector<16xf32>
    %58 = vector.multi_reduction <add>, %57, %cst_39 [1] : vector<16x32xf32> to vector<16xf32>
    %59 = vector.shape_cast %58 : vector<16xf32> to vector<16x1xf32>
    %cst_40 = arith.constant 3.200000e+01 : f32
    %60 = vector.broadcast %cst_40 : f32 to vector<16x1xf32>
    %61 = arith.divf %59, %60 : vector<16x1xf32>
    %cst_41 = arith.constant 9.99999974E-6 : f32
    %62 = vector.broadcast %cst_41 : f32 to vector<16x1xf32>
    %63 = arith.addf %61, %62 : vector<16x1xf32>
    %64 = math.rsqrt %63 : vector<16x1xf32>
    %65 = vector.broadcast %54 : vector<16x1xf32> to vector<16x32xf32>
    %66 = arith.subf %48, %65 : vector<16x32xf32>
    %67 = vector.broadcast %64 : vector<16x1xf32> to vector<16x32xf32>
    %68 = arith.mulf %66, %67 : vector<16x32xf32>
    %69 = vector.broadcast %49 : vector<1x32xf32> to vector<16x32xf32>
    %70 = arith.mulf %68, %69 : vector<16x32xf32>
    %71 = vector.broadcast %50 : vector<1x32xf32> to vector<16x32xf32>
    %72 = arith.addf %70, %71 : vector<16x32xf32>
    %c0_42 = arith.constant 0 : index
    %c0_43 = arith.constant 0 : index
    %73 = vector.load %arg15[%c0_42, %c0_43] : memref<16x32xf32, #tpu.memory_space<vmem>>, vector<16x32xf32>
    tpu.vector_store %arg15[%c0_42, %c0_43], %72 {strides = array<i32>} : memref<16x32xf32, #tpu.memory_space<vmem>>, vector<16x32xf32>,
    return
  }
  func.func @transform_0(%arg0: i32) -> (i32, i32) {
    %c0_i32 = arith.constant 0 : i32
    %c0_i32_0 = arith.constant 0 : i32
    %c0_i32_1 = arith.constant 0 : i32
    return %c0_i32, %c0_i32_0 : i32, i32
  }
  func.func @transform_1(%arg0: i32) -> (i32, i32) {
    %c0_i32 = arith.constant 0 : i32
    %c0_i32_0 = arith.constant 0 : i32
    %c0_i32_1 = arith.constant 0 : i32
    return %c0_i32, %c0_i32_0 : i32, i32
  }
  func.func @transform_2(%arg0: i32) -> (i32, i32) {
    %c0_i32 = arith.constant 0 : i32
    %c0_i32_0 = arith.constant 0 : i32
    %c0_i32_1 = arith.constant 0 : i32
    return %c0_i32, %c0_i32_0 : i32, i32
  }
  func.func @transform_3(%arg0: i32) -> (i32, i32) {
    %c0_i32 = arith.constant 0 : i32
    %c0_i32_0 = arith.constant 0 : i32
    %c0_i32_1 = arith.constant 0 : i32
    return %c0_i32, %c0_i32_0 : i32, i32
  }
  func.func @transform_4(%arg0: i32) -> (i32, i32) {
    %c0_i32 = arith.constant 0 : i32
    %c0_i32_0 = arith.constant 0 : i32
    %c0_i32_1 = arith.constant 0 : i32
    return %c0_i32, %c0_i32_0 : i32, i32
  }
  func.func @transform_5(%arg0: i32) -> (i32, i32) {
    %c0_i32 = arith.constant 0 : i32
    %c0_i32_0 = arith.constant 0 : i32
    %c0_i32_1 = arith.constant 0 : i32
    return %c0_i32, %c0_i32_0 : i32, i32
  }
  func.func @transform_6(%arg0: i32) -> (i32, i32) {
    %c0_i32 = arith.constant 0 : i32
    %c0_i32_0 = arith.constant 0 : i32
    %c0_i32_1 = arith.constant 0 : i32
    return %c0_i32, %c0_i32_0 : i32, i32
  }
  func.func @transform_7(%arg0: i32) -> (i32, i32) {
    %c0_i32 = arith.constant 0 : i32
    %c0_i32_0 = arith.constant 0 : i32
    %c0_i32_1 = arith.constant 0 : i32
    return %c0_i32, %c0_i32_0 : i32, i32
  }
  func.func @transform_8(%arg0: i32) -> (i32, i32) {
    %c0_i32 = arith.constant 0 : i32
    %c0_i32_0 = arith.constant 0 : i32
    %c0_i32_1 = arith.constant 0 : i32
    return %c0_i32, %c0_i32_0 : i32, i32
  }
  func.func @transform_9(%arg0: i32) -> (i32, i32) {
    %c0_i32 = arith.constant 0 : i32
    %c0_i32_0 = arith.constant 0 : i32
    %c0_i32_1 = arith.constant 0 : i32
    return %c0_i32, %c0_i32_0 : i32, i32
  }
  func.func @transform_10(%arg0: i32) -> (i32, i32) {
    %c0_i32 = arith.constant 0 : i32
    %c0_i32_0 = arith.constant 0 : i32
    %c0_i32_1 = arith.constant 0 : i32
    return %c0_i32, %c0_i32_0 : i32, i32
  }
  func.func @transform_11(%arg0: i32) -> (i32, i32) {
    %c0_i32 = arith.constant 0 : i32
    %c0_i32_0 = arith.constant 0 : i32
    %c0_i32_1 = arith.constant 0 : i32
    return %c0_i32, %c0_i32_0 : i32, i32
  }
  func.func @transform_12(%arg0: i32) -> (i32, i32) {
    %c0_i32 = arith.constant 0 : i32
    %c0_i32_0 = arith.constant 0 : i32
    %c0_i32_1 = arith.constant 0 : i32
    return %c0_i32, %c0_i32_0 : i32, i32
  }
  func.func @transform_13(%arg0: i32) -> (i32, i32) {
    %c0_i32 = arith.constant 0 : i32
    %c0_i32_0 = arith.constant 0 : i32
    %c0_i32_1 = arith.constant 0 : i32
    return %c0_i32, %c0_i32_0 : i32, i32
  }
  func.func @transform_14(%arg0: i32) -> (i32, i32) {
    %c0_i32 = arith.constant 0 : i32
    %c0_i32_0 = arith.constant 0 : i32
    %c0_i32_1 = arith.constant 0 : i32
    return %c0_i32, %c0_i32_0 : i32, i32
  }
}

</mosaic_0001>

<bundles_post_ra>
// kernel: tpu_custom_call.1
= control target key start
LH: loop header
LB: loop body
LE: loop exit
PB: predicated region body
PF: predicated region fallthrough
CT: control target
= control target key end

     0   :  { %19 = vsyncpa [#allocation3], 0  ;;  %s790_s0 = inlined_call_operand.hbm [shape: f32[16,32], index: 0, kind: input, shape index: {}]   ;;  %s791_s1 = inlined_call_operand.hbm [shape: f32[16,32], index: 1, kind: input, shape index: {}]   ;;  %s792_s2 = inlined_call_operand.vmem [shape: f32[32,32], index: 2, kind: input, shape index: {}]   ;;  %s793_s3 = inlined_call_operand.vmem [shape: f32[32,32], index: 3, kind: input, shape index: {}]   ;;  %s794_s4 = inlined_call_operand.vmem [shape: f32[1,32], index: 4, kind: input, shape index: {}]   ;;  %s795_s5 = inlined_call_operand.vmem [shape: f32[1,32], index: 5, kind: input, shape index: {}]   ;;  %s796_s6 = inlined_call_operand.vmem [shape: f32[1,32], index: 6, kind: input, shape index: {}]   ;;  %s797_s7 = inlined_call_operand.vmem [shape: f32[1,32], index: 7, kind: input, shape index: {}]   ;;  %s798_s8 = inlined_call_operand.vmem [shape: f32[1,32], index: 8, kind: input, shape index: {}]   ;;  %s799_s9 = inlined_call_operand.vmem [shape: f32[32,64], index: 9, kind: input, shape index: {}]   ;;  %s800_s10 = inlined_call_operand.vmem [shape: f32[1,64], index: 10, kind: input, shape index: {}]   ;;  %s801_s11 = inlined_call_operand.vmem [shape: f32[64,32], index: 11, kind: input, shape index: {}]   ;;  %s802_s12 = inlined_call_operand.vmem [shape: f32[1,32], index: 12, kind: input, shape index: {}]   ;;  %s803_s13 = inlined_call_operand.hbm [shape: f32[16,16], index: 13, kind: input, shape index: {}]   ;;  %s804_s14 = inlined_call_operand.hbm [shape: f32[16,32], index: 14, kind: output, shape index: {}]  }
   0x1   :  { %20 = vsyncpa [#allocation6], 0 }
   0x2   :  { %21 = vsyncpa [#allocation4], 0  ;;  %s39_s15 = sshll.u32 %s791_s1, 4  ;;  %s572_s16 = smov [#allocation5]   ;;  %s40_s15 = int_to_ptr.hbm [resolvable:$true] %s39_s15 }
   0x3   :  { %s41_s17 = sshll.u32 %s572_s16, 4  ;;  %s26_s20 = sshll.u32 %s790_s0, 4  ;;  %s42_s17 = int_to_ptr.vmem [resolvable:$true] %s41_s17  ;;  %s27_s20 = int_to_ptr.hbm [resolvable:$true] %s26_s20 }
   0x4   :  { %s573_s21 = smov 128   ;;  %s574_s22 = smov 8  }
   0x5   :  { %47 = dma.hbm_to_vmem [thread:$0]  %s40_s15, 256, %s42_s17, [#allocation6], %s573_s21, %s573_s21, %s574_s22  }
   0x6   :  { %s575_s23 = smov [#allocation2]   ;;  %s74_s1 = sshll.u32 %s803_s13, 4  ;;  %s75_s1 = int_to_ptr.hbm [resolvable:$true] %s74_s1 }
   0x7   :  { %s28_s24 = sshll.u32 %s575_s23, 4  ;;  %s576_s0 = smov [#allocation7]   ;;  %s29_s24 = int_to_ptr.vmem [resolvable:$true] %s28_s24 }
   0x8   :  { %34 = dma.hbm_to_vmem [thread:$0]  %s27_s20, 256, %s29_s24, [#allocation3], %s573_s21, %s573_s21, %s574_s22  }
   0x9   :  { %s76_s27 = sshll.u32 %s576_s0, 4  ;;  %s77_s27 = int_to_ptr.vmem [resolvable:$true] %s76_s27 }
   0xa   :  { %82 = dma.hbm_to_vmem [thread:$0]  %s75_s1, 256, %s77_s27, [#allocation6], %s573_s21, %s573_s21, %s574_s22  }
   0xb   :  { %566 = dma.done.wait [#allocation3], 256  }
   0xc   :  { %567 = vsyncadd [#allocation3], 4294967040 }
   0xd   :  { %568 = dma.done.wait [#allocation6], 512  }
   0xe   :  { %569 = vsyncadd [#allocation6], 4294966784  ;;  %v102_v0 = vld [vmem:[%s792_s2 + $0x18] sm:$0xff]  ;;  %v101_v1 = vld [vmem:[%s792_s2 + $0x10] sm:$0xff]  ;;  %vm103_vm0 = vcmask 261120   ;;  %vm135_vm1 = vcmask 130048  }
   0xf   :  { %122 = vmatpush.msra.mxu0 %v102_v0  ;;  %v100_v2 = vld [vmem:[%s792_s2 + $0x8] sm:$0xff]  ;;  %v99_v3 = vld [vmem:[%s792_s2] sm:$0xff]  ;;  %v97_v4 = vld [vmem:[#allocation5] sm:$0xff]  ;;  %v577_v27 = vmov 32.0   ;;  %vm318_vm9 = vcmask 523264   ;;  %s414_s24 = sshll.u32 %s804_s14, 4  ;;  %s415_s24 = int_to_ptr.hbm [resolvable:$true] %s414_s24 }
  0x10   :  { %v98_v5 = vld [vmem:[#allocation5 + $0x8] sm:$0xff]  ;;  %v167_v7 = vld [vmem:[%s793_s3 + $0x10] sm:$0xff]  ;;  %v166_v8 = vld [vmem:[%s793_s3 + $0x8] sm:$0xff]  ;;  %460 = vrcp.f32 %v577_v27 }
  0x11   :  { %123 = vmatpush.msra.mxu0 %v101_v1  ;;  %v168_v6 = vld [vmem:[%s793_s3 + $0x18] sm:$0xff]  ;;  %v133_v11 = vld [vmem:[#allocation7] sm:$0xff]  ;;  %v134_v12 = vld [vmem:[#allocation7 + $0x8] sm:$0xff] }
  0x12   :  { %191 = vmatpush.msra.mxu2 %v168_v6  ;;  %v165_v13 = vld [vmem:[%s793_s3] sm:$0xff]  ;;  %v96_v23 = vld [vmem:[#allocation2 + $0x8] sm:$0xff]  ;;  %v270_v44 = vld [vmem:[%s799_s9 + $0x18] sm:$0xff] }
  0x13   :  { %124 = vmatpush.msra.mxu0 %v100_v2  ;;  %v453_v16 = vld [vmem:[%s794_s4] ss:$0 sm:$0xff]  ;;  %293 = vmatpush.msra.mxu3 %v270_v44  ;;  %v269_v45 = vld [vmem:[%s799_s9 + $0x10] sm:$0xff]  ;;  %v268_v46 = vld [vmem:[%s799_s9 + $0x8] sm:$0xff] }
  0x14   :  { %192 = vmatpush.msra.mxu2 %v167_v7  ;;  %v95_v18 = vld [vmem:[#allocation2] sm:$0xff]  ;;  %v313_v51 = vld [vmem:[%s801_s11 + $0x38] sm:$0xff]  ;;  %v312_v52 = vld [vmem:[%s801_s11 + $0x30] sm:$0xff] }
  0x15   :  { %125 = vmatpush.msra.mxu0 %v99_v3  ;;  %294 = vmatpush.msra.mxu3 %v269_v45  ;;  %v267_v47 = vld [vmem:[%s799_s9] sm:$0xff]  ;;  %v311_v53 = vld [vmem:[%s801_s11 + $0x28] sm:$0xff]  ;;  %v309_v59 = vld [vmem:[%s801_s11 + $0x18] sm:$0xff] }
  0x16   :  { %428 = vmatmul.msk.f32.vlgmr.msra.gmra.mxu0 %vm103_vm0, %v97_v4  ;;  %193 = vmatpush.msra.mxu2 %v166_v8  ;;  %v461_v28 = vpop.eup %460  ;;  %v310_v56 = vld [vmem:[%s801_s11 + $0x20] sm:$0xff]  ;;  %v308_v61 = vld [vmem:[%s801_s11 + $0x10] sm:$0xff] }
  0x17   :  { %v213_v29 = vmul.f32 32.0, %v461_v28  ;;  %vm217_vm2 = vweird.f32 %v461_v28  ;;  %295 = vmatpush.msra.mxu3 %v268_v46  ;;  %333 = vmatpush.msrb.mxu0 %v313_v51  ;;  %v454_v4 = vld [vmem:[%s795_s5] ss:$0 sm:$0xff] }
  0x18   :  { %194 = vmatpush.msra.mxu2 %v165_v13  ;;  %v455_v8 = vld [vmem:[%s796_s6] ss:$0 sm:$0xff] }
  0x19   :  { %v214_v30 = vsub.f32 1.0, %v213_v29  ;;  %296 = vmatpush.msra.mxu3 %v267_v47  ;;  %334 = vmatpush.msrb.mxu0 %v312_v52  ;;  %v457_v27 = vld [vmem:[%s802_s12] ss:$0 sm:$0xff] }
  0x1b   :  { %v215_v31 = vmul.f32 %v461_v28, %v214_v30  ;;  %335 = vmatpush.msrb.mxu0 %v311_v53 }
  0x1d   :  { %v216_v32 = vadd.f32 %v461_v28, %v215_v31  ;;  %336 = vmatpush.msrb.mxu0 %v310_v56 }
  0x1e   :  { %429 = vmatmul.msk.f32.gmra.mxu0 %vm103_vm0, %v98_v5 }
  0x1f   :  { %v705_v33 = vsel %vm217_vm2, %v461_v28, %v216_v32  ;;  %337 = vmatpush.msrb.mxu0 %v309_v59 }
  0x21   :  { %338 = vmatpush.msrb.mxu0 %v308_v61 }
  0x93   :  { %v127_v9 = vpop.f32.mrf.mxu0 }
  0x9b   :  { %v130_v10 = vpop.f32.mrf.mxu0 }
  0x9c   :  { %156 = vmatpush.msra.mxu1 %v130_v10 }
  0x9e   :  { %157 = vmatpush.msra.mxu1 %v127_v9 }
  0x9f   :  { %430 = vmatmul.msk.f32.vlgmr.msra.gmra.mxu1 %vm135_vm1, %v133_v11 }
  0xa0   :  { %438 = vmatpush.msrb.mxu1 %v313_v51 }
  0xa2   :  { %439 = vmatpush.msrb.mxu1 %v312_v52 }
  0xa4   :  { %440 = vmatpush.msrb.mxu1 %v311_v53 }
  0xa6   :  { %441 = vmatpush.msrb.mxu1 %v310_v56 }
  0xa7   :  { %431 = vmatmul.msk.f32.gmra.mxu1 %vm135_vm1, %v134_v12 }
  0xa8   :  { %442 = vmatpush.msrb.mxu1 %v309_v59 }
  0xaa   :  { %443 = vmatpush.msrb.mxu1 %v308_v61  ;;  %v458_v61 = vld [vmem:[%s797_s7] ss:$0 sm:$0xff]  ;;  %s578_s7 = smov [#allocation8]  }
  0xab   :  { %s412_s19 = sshll.u32 %s578_s7, 4  ;;  %s413_s19 = int_to_ptr.vmem [resolvable:$true] %s412_s19 }
 0x11c   :  { %v159_v14 = vpop.f32.mrf.mxu1 }
 0x11d   :  { %432 = vmatmul.msk.f32.vlgmr.msra.gmra.mxu2 %vm103_vm0, %v159_v14 }
 0x124   :  { %v162_v15 = vpop.f32.mrf.mxu1 }
 0x125   :  { %433 = vmatmul.msk.f32.gmra.mxu2 %vm103_vm0, %v162_v15 }
 0x1a0   :  { %v196_v17 = vpop.f32.mrf.mxu2 }
 0x1a1   :  { %v197_v19 = vadd.f32 %v453_v16, %v196_v17 }
 0x1a3   :  { %v202_v20 = vadd.f32 %v197_v19, %v95_v18  ;;  %v307_v18 = vld [vmem:[%s801_s11 + $0x8] sm:$0xff]  ;;  %v306_v19 = vld [vmem:[%s801_s11] sm:$0xff] }
 0x1a4   :  { %339 = vmatpush.msrb.mxu0 %v307_v18  ;;  %444 = vmatpush.msrb.mxu1 %v307_v18 }
 0x1a5   :  { %v206_v21 = vsel %vm103_vm0, %v202_v20, 0.0 }
 0x1a6   :  { %207 = vadd.xlane.f32.xlu0 %v206_v21  ;;  %340 = vmatpush.msrb.mxu0 %v306_v19 }
 0x1a7   :  { %445 = vmatpush.msrb.mxu1 %v306_v19 }
 0x1a8   :  { %v199_v22 = vpop.f32.mrf.mxu2 }
 0x1a9   :  { %v200_v24 = vadd.f32 %v453_v16, %v199_v22 }
 0x1ab   :  { %v203_v25 = vadd.f32 %v200_v24, %v96_v23 }
 0x1ad   :  { %v209_v26 = vsel %vm103_vm0, %v203_v25, 0.0 }
 0x1ae   :  { %210 = vadd.xlane.f32.xlu0 %v209_v26 }
 0x219   :  { %v208_v34 = vpop.xlane.xlu0 %207 }
 0x21a   :  { %v219_v35 = vmul.f32 %v705_v33, %v208_v34 }
 0x21c   :  { %v221_v36 = vsub.f32 %v202_v20, %v219_v35  ;;  %v456_v20 = vld [vmem:[%s800_s10] ss:$0 sm:$0xff] }
 0x21e   :  { %v223_v37 = vmul.f32 %v221_v36, %v221_v36 }
 0x220   :  { %v225_v38 = vsel %vm103_vm0, %v223_v37, 0.0 }
 0x221   :  { %226 = vadd.xlane.f32.xlu1 %v225_v38  ;;  %v211_v39 = vpop.xlane.xlu0 %210 }
 0x222   :  { %v220_v40 = vmul.f32 %v705_v33, %v211_v39 }
 0x224   :  { %v710_v41 = vsub.f32 %v203_v25, %v220_v40 }
 0x226   :  { %v224_v42 = vmul.f32 %v710_v41, %v710_v41 }
 0x228   :  { %v228_v43 = vsel %vm103_vm0, %v224_v42, 0.0 }
 0x229   :  { %229 = vadd.xlane.f32.xlu1 %v228_v43 }
 0x294   :  { %v227_v48 = vpop.xlane.xlu1 %226 }
 0x295   :  { %v231_v49 = vmul.f32 %v227_v48, %v705_v33 }
 0x297   :  { %v233_v50 = vadd.f32 1e-05, %v231_v49 }
 0x299   :  { %462 = vrsqrt.f32 %v233_v50  ;;  %vm241_vm4 = vweird.f32 %v233_v50 }
 0x29c   :  { %v230_v54 = vpop.xlane.xlu1 %229 }
 0x29d   :  { %v232_v55 = vmul.f32 %v230_v54, %v705_v33 }
 0x29f   :  { %v463_v57 = vpop.eup %462  ;;  %v234_v58 = vadd.f32 1e-05, %v232_v55 }
 0x2a0   :  { %v236_v60 = vmul.f32 %v463_v57, %v233_v50  ;;  %vm242_vm3 = vweird.f32 %v463_v57 }
 0x2a1   :  { %464 = vrsqrt.f32 %v234_v58  ;;  %vm243_vm5 = vmor %vm241_vm4, %vm242_vm3  ;;  %vm251_vm7 = vweird.f32 %v234_v58 }
 0x2a2   :  { %v237_v62 = vmul.f32 %v463_v57, %v236_v60 }
 0x2a4   :  { %v238_v63 = vmul.f32 0.5, %v237_v62 }
 0x2a6   :  { %v239_v0 = vsub.f32 1.5, %v238_v63 }
 0x2a7   :  { %v465_v1 = vpop.eup %464 }
 0x2a8   :  { %v240_v2 = vmul.f32 %v463_v57, %v239_v0  ;;  %v246_v3 = vmul.f32 %v465_v1, %v234_v58  ;;  %vm252_vm6 = vweird.f32 %v465_v1  ;;  %v459_v0 = vld [vmem:[%s798_s8] ss:$0 sm:$0xff] }
 0x2a9   :  { %vm253_vm8 = vmor %vm251_vm7, %vm252_vm6 }
 0x2aa   :  { %v244_v5 = vsel %vm243_vm5, %v463_v57, %v240_v2  ;;  %v247_v6 = vmul.f32 %v465_v1, %v246_v3 }
 0x2ab   :  { %v255_v7 = vmul.f32 %v244_v5, %v221_v36 }
 0x2ac   :  { %v248_v9 = vmul.f32 0.5, %v247_v6 }
 0x2ad   :  { %v260_v10 = vmul.f32 %v454_v4, %v255_v7 }
 0x2ae   :  { %v249_v11 = vsub.f32 1.5, %v248_v9 }
 0x2af   :  { %v265_v12 = vadd.f32 %v455_v8, %v260_v10 }
 0x2b0   :  { %v250_v13 = vmul.f32 %v465_v1, %v249_v11 }
 0x2b1   :  { %434 = vmatmul.msk.f32.vlgmr.msra.gmra.mxu3 %vm103_vm0, %v265_v12 }
 0x2b2   :  { %v254_v14 = vsel %vm253_vm8, %v465_v1, %v250_v13 }
 0x2b3   :  { %v256_v15 = vmul.f32 %v254_v14, %v710_v41 }
 0x2b5   :  { %v261_v16 = vmul.f32 %v454_v4, %v256_v15 }
 0x2b7   :  { %v266_v17 = vadd.f32 %v455_v8, %v261_v16 }
 0x2b9   :  { %435 = vmatmul.msk.f32.gmra.mxu3 %vm103_vm0, %v266_v17 }
 0x334   :  { %v298_v21 = vpop.f32.mrf.mxu3 }
 0x335   :  { %v299_v22 = vadd.f32 %v456_v20, %v298_v21 }
 0x337   :  { %v304_v23 = vmax.f32 %v299_v22, 0.0 }
 0x339   :  { %436 = vmatmul.msk.f32.vlgmr.msrb.gmra.mxu0 %vm318_vm9, %v304_v23 }
 0x33c   :  { %v301_v24 = vpop.f32.mrf.mxu3 }
 0x33d   :  { %v302_v25 = vadd.f32 %v456_v20, %v301_v24 }
 0x33f   :  { %v305_v26 = vmax.f32 %v302_v25, 0.0 }
 0x341   :  { %437 = vmatmul.msk.f32.vlgmr.msrb.gmra.mxu1 %vm318_vm9, %v305_v26 }
 0x3b6   :  { %v342_v28 = vpop.f32.mrf.mxu0 }
 0x3b7   :  { %v343_v29 = vadd.f32 %v457_v27, %v342_v28 }
 0x3b9   :  { %v348_v30 = vadd.f32 %v343_v29, %v265_v12 }
 0x3bb   :  { %v352_v31 = vsel %vm103_vm0, %v348_v30, 0.0 }
 0x3bc   :  { %353 = vadd.xlane.f32.xlu2 %v352_v31 }
 0x3be   :  { %v345_v32 = vpop.f32.mrf.mxu1 }
 0x3bf   :  { %v346_v34 = vadd.f32 %v457_v27, %v345_v32 }
 0x3c1   :  { %v349_v35 = vadd.f32 %v346_v34, %v266_v17 }
 0x3c3   :  { %v355_v36 = vsel %vm103_vm0, %v349_v35, 0.0 }
 0x3c4   :  { %356 = vadd.xlane.f32.xlu2 %v355_v36 }
 0x42f   :  { %v354_v37 = vpop.xlane.xlu2 %353 }
 0x430   :  { %v358_v38 = vmul.f32 %v354_v37, %v705_v33 }
 0x432   :  { %v360_v39 = vsub.f32 %v348_v30, %v358_v38 }
 0x434   :  { %v362_v40 = vmul.f32 %v360_v39, %v360_v39 }
 0x436   :  { %v364_v41 = vsel %vm103_vm0, %v362_v40, 0.0 }
 0x437   :  { %365 = vadd.xlane.f32.xlu0 %v364_v41  ;;  %v357_v42 = vpop.xlane.xlu2 %356 }
 0x438   :  { %v359_v43 = vmul.f32 %v357_v42, %v705_v33 }
 0x43a   :  { %v361_v44 = vsub.f32 %v349_v35, %v359_v43 }
 0x43c   :  { %v363_v45 = vmul.f32 %v361_v44, %v361_v44 }
 0x43e   :  { %v367_v46 = vsel %vm103_vm0, %v363_v45, 0.0 }
 0x43f   :  { %368 = vadd.xlane.f32.xlu1 %v367_v46 }
 0x4aa   :  { %v366_v47 = vpop.xlane.xlu0 %365 }
 0x4ab   :  { %v370_v48 = vmul.f32 %v366_v47, %v705_v33 }
 0x4ad   :  { %v372_v49 = vadd.f32 1e-05, %v370_v48 }
 0x4af   :  { %466 = vrsqrt.f32 %v372_v49  ;;  %vm380_vm11 = vweird.f32 %v372_v49 }
 0x4b2   :  { %v369_v50 = vpop.xlane.xlu1 %368 }
 0x4b3   :  { %v371_v51 = vmul.f32 %v369_v50, %v705_v33 }
 0x4b5   :  { %v467_v52 = vpop.eup %466  ;;  %v373_v53 = vadd.f32 1e-05, %v371_v51 }
 0x4b6   :  { %v375_v54 = vmul.f32 %v467_v52, %v372_v49  ;;  %vm381_vm10 = vweird.f32 %v467_v52 }
 0x4b7   :  { %468 = vrsqrt.f32 %v373_v53  ;;  %vm382_vm12 = vmor %vm380_vm11, %vm381_vm10  ;;  %vm390_vm14 = vweird.f32 %v373_v53 }
 0x4b8   :  { %v376_v55 = vmul.f32 %v467_v52, %v375_v54 }
 0x4ba   :  { %v377_v56 = vmul.f32 0.5, %v376_v55 }
 0x4bc   :  { %v378_v57 = vsub.f32 1.5, %v377_v56 }
 0x4bd   :  { %v469_v58 = vpop.eup %468 }
 0x4be   :  { %v379_v59 = vmul.f32 %v467_v52, %v378_v57  ;;  %v385_v60 = vmul.f32 %v469_v58, %v373_v53  ;;  %vm391_vm13 = vweird.f32 %v469_v58 }
 0x4bf   :  { %vm392_vm15 = vmor %vm390_vm14, %vm391_vm13 }
 0x4c0   :  { %v383_v62 = vsel %vm382_vm12, %v467_v52, %v379_v59  ;;  %v386_v63 = vmul.f32 %v469_v58, %v385_v60 }
 0x4c1   :  { %v394_v33 = vmul.f32 %v383_v62, %v360_v39 }
 0x4c2   :  { %v387_v1 = vmul.f32 0.5, %v386_v63 }
 0x4c3   :  { %v399_v2 = vmul.f32 %v458_v61, %v394_v33 }
 0x4c4   :  { %v388_v3 = vsub.f32 1.5, %v387_v1 }
 0x4c5   :  { %v404_v4 = vadd.f32 %v459_v0, %v399_v2 }
 0x4c6   :  { %v389_v5 = vmul.f32 %v469_v58, %v388_v3 }
 0x4c7   :  { %406 = vst.msk [vmem:[#allocation8] sm:$0xff] %vm103_vm0, %v404_v4 }
 0x4c8   :  { %v393_v6 = vsel %vm392_vm15, %v469_v58, %v389_v5 }
 0x4c9   :  { %v395_v7 = vmul.f32 %v393_v6, %v361_v44 }
 0x4cb   :  { %v400_v8 = vmul.f32 %v458_v61, %v395_v7 }
 0x4cd   :  { %v405_v9 = vadd.f32 %v459_v0, %v400_v8 }
 0x4cf   :  { %407 = vst.msk [vmem:[#allocation8 + $0x8] sm:$0xff] %vm103_vm0, %v405_v9 }
 0x4d0   :  { %420 = dma.vmem_to_hbm [thread:$0]  %s413_s19, 256, %s415_s24, [#allocation4], %s573_s21, %s573_s21, %s574_s22  }
 0x4d1   :  { %570 = dma.done.wait [#allocation4], 256  }
 0x4d2   :  { %571 = vsyncadd [#allocation4], 4294967040 }
 0x4d3   :  { %425 = vsyncpa [#allocation3], 1 }
 0x4d4   :  { %426 = vsyncpa [#allocation6], 1 }
 0x4d5   :  { %427 = vsyncpa [#allocation4], 1 }

</bundles_post_ra>
